<compile_context>
chip_gen: v7x
topology: tpu7x:2x2x1
jax: 0.10.0
libtpu: 0.0.40
codegen_flags: <defaults>
</compile_context>

<pallas_src>
import jax
import jax.numpy as jnp
from jax.experimental import pallas as pl
from jax.experimental.pallas import tpu as pltpu

HIDDEN = 32


def _round_up(x, m):
    return ((x + m - 1) // m) * m


def _auto_tile_b(W, in_itemsize, out_itemsize, vmem_budget_bytes=12 * 1024 * 1024):
    """Pick the largest lane-tile whose estimated per-step VMEM stays in budget."""
    per_lane = (2 * W * in_itemsize          # double-buffered x^T tile
                + 2 * out_itemsize           # double-buffered output row
                + 2 * HIDDEN * 4             # two live f32 [32, tb] activations
                + HIDDEN * in_itemsize)      # one compute-dtype staging copy
    tb = vmem_budget_bytes // per_lane
    tb = max(128, (tb // 128) * 128)
    return int(min(tb, 65536))


def _mlp_kernel(xT_ref, w1_ref, b1_ref, w2_ref, b2_ref, w3c_ref, b3_ref, o_ref):
    # xT_ref: [W, TILE_B] (batch on lanes).  w1/w2 are [out, in] (PyTorch
    # orientation), biases / w3 column are f32 with a broadcastable lane dim.
    xT = xT_ref[...].astype(w1_ref.dtype)

    # fc1 + ReLU on the MXU, f32 accumulation -> [32, TILE_B].
    h = jnp.dot(w1_ref[...], xT, preferred_element_type=jnp.float32)
    h = jnp.maximum(h + b1_ref[...], 0.0)

    # fc2 + ReLU; contraction in compute dtype (documented precision choice).
    h = jnp.dot(w2_ref[...], h.astype(w2_ref.dtype),
                preferred_element_type=jnp.float32)
    h = jnp.maximum(h + b2_ref[...], 0.0)

    # f3 (out_features=1): per-sublane scale (VPU) + sublane reduce (XLU)
    # instead of an M=1 MXU matmul; stays in f32. -> [1, TILE_B]
    out = jnp.sum(w3c_ref[...] * h, axis=0, keepdims=True)
    o_ref[...] = (out + b3_ref[...]).astype(o_ref.dtype)


def _prepare_params(params, compute_dtype):
    """Cast/reshape PyTorch-layout params once (hoistable for repeated use)."""
    w1, b1, w2, b2, w3, b3 = params
    return (
        w1.astype(compute_dtype),                         # [32, W]
        b1.reshape(HIDDEN, 1).astype(jnp.float32),        # [32, 1]
        w2.astype(compute_dtype),                         # [32, 32]
        b2.reshape(HIDDEN, 1).astype(jnp.float32),        # [32, 1]
        w3.reshape(HIDDEN, 1).astype(jnp.float32),        # [32, 1] column for VPU scale
        b3.reshape(1, 1).astype(jnp.float32),             # [1, 1]
    )


def mlp_memory_predict(x, params, *, tile_b=None, compute_dtype=jnp.bfloat16,
                       out_dtype=jnp.float32, x_is_feature_major=False):
    """Forward pass of MlpMemoryPredict.

    x: [B, W] float (or [W, B] if x_is_feature_major=True, avoiding any wrapper
       relayout pass entirely).
    params (PyTorch layout): fc1.weight [32, W], fc1.bias [32],
                             fc2.weight [32, 32], fc2.bias [32],
                             f3.weight  [1, 32],  f3.bias  [1].
    Returns [B] in out_dtype (== module forward followed by squeeze(1)).
    """
    w1c, b1c, w2c, b2c, w3c, b3c = _prepare_params(params, compute_dtype)

    if x_is_feature_major:
        xT = x                                   # [W, B], used as-is (zero extra passes)
    else:
        # Single fused transpose+convert pass; no separate pad pass.
        xT = x.T.astype(compute_dtype)           # [W, B]
    W, B = xT.shape

    in_itemsize = jnp.dtype(xT.dtype).itemsize
    out_itemsize = jnp.dtype(out_dtype).itemsize

    # ---- tile / grid selection -------------------------------------------
    if B <= 256:
        # Single full-array block (legal regardless of 128-divisibility).
        tb = B
    else:
        cap = (_auto_tile_b(W, in_itemsize, out_itemsize) if tile_b is None
               else max(128, _round_up(int(tile_b), 128)))
        # Keep >= 2 grid steps so the "parallel" axis feeds both TCs on v7x.
        tb = min(cap, _round_up(pl.cdiv(B, 2), 128))
    num_tiles = pl.cdiv(B, tb)
    # The last block may run past B: safe because each output column depends
    # only on its own input column (contractions are over W/HIDDEN only) and
    # out-of-bounds stores are masked by Pallas.

    # Weights/biases: constant index_map -> resident in VMEM across steps.
    const = lambda shape: pl.BlockSpec(shape, lambda i: (0,) * len(shape))

    flops = 2 * B * (W * HIDDEN + HIDDEN * HIDDEN + HIDDEN)
    bytes_accessed = (
        xT.size * in_itemsize
        + B * out_itemsize
        + (w1c.size + w2c.size) * jnp.dtype(compute_dtype).itemsize
        + (b1c.size + b2c.size + w3c.size + b3c.size) * 4
    )

    out2d = pl.pallas_call(
        _mlp_kernel,
        out_shape=jax.ShapeDtypeStruct((1, B), out_dtype),
        grid=(num_tiles,),
        in_specs=[
            pl.BlockSpec((W, tb), lambda i: (0, i)),   # x^T tile, batch on lanes
            const((HIDDEN, W)),
            const((HIDDEN, 1)),
            const((HIDDEN, HIDDEN)),
            const((HIDDEN, 1)),
            const((HIDDEN, 1)),                        # w3 as f32 column
            const((1, 1)),
        ],
        out_specs=pl.BlockSpec((1, tb), lambda i: (0, i)),   # lane-dense output
        compiler_params=pltpu.CompilerParams(
            dimension_semantics=("parallel",),        # 2 TCs on v7x; no-op v5e/v6e
            vmem_limit_bytes=32 * 1024 * 1024,        # >= scoped defaults, < physical
        ),
        cost_estimate=pl.CostEstimate(
            flops=flops, transcendentals=0, bytes_accessed=bytes_accessed),
    )(xT, w1c, b1c, w2c, b2c, w3c, b3c)

    return out2d[0]   # squeeze(1)


def init_params(key, windows_size):
    """Deterministic synthetic parameters in the PyTorch shapes."""
    k1, k2, k3, k4, k5, k6 = jax.random.split(key, 6)
    w1 = jax.random.normal(k1, (HIDDEN, windows_size), jnp.float32) * 0.1
    b1 = jax.random.normal(k2, (HIDDEN,), jnp.float32) * 0.1
    w2 = jax.random.normal(k3, (HIDDEN, HIDDEN), jnp.float32) * 0.1
    b2 = jax.random.normal(k4, (HIDDEN,), jnp.float32) * 0.1
    w3 = jax.random.normal(k5, (1, HIDDEN), jnp.float32) * 0.1
    b3 = jax.random.normal(k6, (1,), jnp.float32) * 0.1
    return (w1, b1, w2, b2, w3, b3)


def _reference(x, params):
    w1, b1, w2, b2, w3, b3 = params
    h = jnp.maximum(x @ w1.T + b1, 0.0)
    h = jnp.maximum(h @ w2.T + b2, 0.0)
    return (h @ w3.T + b3)[:, 0]


if __name__ == "__main__":
    key = jax.random.PRNGKey(0)
    kx, kp, kx2 = jax.random.split(key, 3)

    batch = 8
    windows_size = 8  # Linear(windows_size, 32) -> seq=8 scale

    x = jax.random.normal(kx, (batch, windows_size), jnp.float32)
    params = init_params(kp, windows_size)
    ref = _reference(x, params)

    # f32 path: exact structural check against the reference.
    out_f32 = jax.block_until_ready(
        mlp_memory_predict(x, params, compute_dtype=jnp.float32))
    assert out_f32.shape == (batch,)
    assert jnp.allclose(out_f32, ref, atol=1e-4, rtol=1e-4)

    # bf16 path (optimized default): looser tolerance for the MXU-operand cast.
    out_bf16 = jax.block_until_ready(mlp_memory_predict(x, params))
    assert out_bf16.shape == (batch,)
    assert jnp.allclose(out_bf16, ref, atol=2e-2, rtol=2e-2)

    # Multi-tile grid with an un-padded partial last block (B=300 -> tb=256, 2 steps).
    batch2 = 300
    x2 = jax.random.normal(kx2, (batch2, windows_size), jnp.float32)
    ref2 = _reference(x2, params)
    out2 = jax.block_until_ready(mlp_memory_predict(x2, params))
    assert out2.shape == (batch2,)
    assert jnp.allclose(out2, ref2, atol=2e-2, rtol=2e-2)

    # Explicit small tile: 3 grid steps, exercises the double-buffered pipeline.
    out3 = jax.block_until_ready(mlp_memory_predict(x2, params, tile_b=128))
    assert jnp.allclose(out3, ref2, atol=2e-2, rtol=2e-2)

    # Producer already feature-major / bf16: zero wrapper relayout passes.
    out4 = jax.block_until_ready(
        mlp_memory_predict(x.T.astype(jnp.bfloat16), params, x_is_feature_major=True))
    assert jnp.allclose(out4, ref, atol=2e-2, rtol=2e-2)

    print("KERNEL_OK")
</pallas_src>

<mosaic_0001>
module attributes {stable_mosaic.version = 11 : i64} {
  func.func @_mlp_kernel(%arg0: i32, %arg1: memref<8x8xf32, #tpu.memory_space<vmem>>, %arg2: memref<32x8xf32, #tpu.memory_space<vmem>>, %arg3: memref<32x1xf32, #tpu.memory_space<vmem>>, %arg4: memref<32x32xf32, #tpu.memory_space<vmem>>, %arg5: memref<32x1xf32, #tpu.memory_space<vmem>>, %arg6: memref<32x1xf32, #tpu.memory_space<vmem>>, %arg7: memref<1x1xf32, #tpu.memory_space<vmem>>, %arg8: memref<1x8xf32, #tpu.memory_space<vmem>>) attributes {dimension_semantics = [#tpu.dimension_semantics<parallel>], iteration_bounds = array<i64: 1>, scalar_prefetch = 0 : i64, scratch_operands = 0 : i64, tpu.core_type = #tpu.core_type<tc>, window_params = [{transform_indices = @transform_0, window_bounds = array<i64: 8, 8>}, {pipeline_mode = #tpu.pipeline_mode<synchronous>, transform_indices = @transform_1, window_bounds = array<i64: 32, 8>}, {pipeline_mode = #tpu.pipeline_mode<synchronous>, transform_indices = @transform_2, window_bounds = array<i64: 32, 1>}, {pipeline_mode = #tpu.pipeline_mode<synchronous>, transform_indices = @transform_3, window_bounds = array<i64: 32, 32>}, {pipeline_mode = #tpu.pipeline_mode<synchronous>, transform_indices = @transform_4, window_bounds = array<i64: 32, 1>}, {pipeline_mode = #tpu.pipeline_mode<synchronous>, transform_indices = @transform_5, window_bounds = array<i64: 32, 1>}, {pipeline_mode = #tpu.pipeline_mode<synchronous>, transform_indices = @transform_6, window_bounds = array<i64: 1, 1>}, {transform_indices = @transform_7, window_bounds = array<i64: 1, 8>}]} {
    %c0 = arith.constant 0 : index
    %c0_0 = arith.constant 0 : index
    %0 = vector.load %arg1[%c0, %c0_0] : memref<8x8xf32, #tpu.memory_space<vmem>>, vector<8x8xf32>
    %c0_1 = arith.constant 0 : index
    %c0_2 = arith.constant 0 : index
    %1 = vector.load %arg2[%c0_1, %c0_2] : memref<32x8xf32, #tpu.memory_space<vmem>>, vector<32x8xf32>
    %cst = arith.constant dense<0.000000e+00> : vector<32x8xf32>
    %2 = tpu.matmul %1, %0, %cst {dimension_numbers = #tpu.dot_dimension_numbers<[1], [0], [0], [1], [0, 0, 1, 1], [], []>} : vector<32x8xf32>, vector<8x8xf32>, vector<32x8xf32> -> vector<32x8xf32>
    %c0_3 = arith.constant 0 : index
    %c0_4 = arith.constant 0 : index
    %3 = vector.load %arg3[%c0_3, %c0_4] : memref<32x1xf32, #tpu.memory_space<vmem>>, vector<32x1xf32>
    %4 = vector.broadcast %3 : vector<32x1xf32> to vector<32x8xf32>
    %5 = arith.addf %2, %4 : vector<32x8xf32>
    %cst_5 = arith.constant 0.000000e+00 : f32
    %6 = vector.broadcast %cst_5 : f32 to vector<32x8xf32>
    %7 = arith.maximumf %5, %6 : vector<32x8xf32>
    %c0_6 = arith.constant 0 : index
    %c0_7 = arith.constant 0 : index
    %8 = vector.load %arg4[%c0_6, %c0_7] : memref<32x32xf32, #tpu.memory_space<vmem>>, vector<32x32xf32>
    %cst_8 = arith.constant dense<0.000000e+00> : vector<32x8xf32>
    %9 = tpu.matmul %8, %7, %cst_8 {dimension_numbers = #tpu.dot_dimension_numbers<[1], [0], [0], [1], [0, 0, 1, 1], [], []>} : vector<32x32xf32>, vector<32x8xf32>, vector<32x8xf32> -> vector<32x8xf32>
    %c0_9 = arith.constant 0 : index
    %c0_10 = arith.constant 0 : index
    %10 = vector.load %arg5[%c0_9, %c0_10] : memref<32x1xf32, #tpu.memory_space<vmem>>, vector<32x1xf32>
    %11 = vector.broadcast %10 : vector<32x1xf32> to vector<32x8xf32>
    %12 = arith.addf %9, %11 : vector<32x8xf32>
    %cst_11 = arith.constant 0.000000e+00 : f32
    %13 = vector.broadcast %cst_11 : f32 to vector<32x8xf32>
    %14 = arith.maximumf %12, %13 : vector<32x8xf32>
    %c0_12 = arith.constant 0 : index
    %c0_13 = arith.constant 0 : index
    %15 = vector.load %arg6[%c0_12, %c0_13] : memref<32x1xf32, #tpu.memory_space<vmem>>, vector<32x1xf32>
    %16 = vector.broadcast %15 : vector<32x1xf32> to vector<32x8xf32>
    %17 = arith.mulf %16, %14 : vector<32x8xf32>
    %cst_14 = arith.constant dense<0.000000e+00> : vector<8xf32>
    %18 = vector.multi_reduction <add>, %17, %cst_14 [0] : vector<32x8xf32> to vector<8xf32>
    %19 = vector.shape_cast %18 : vector<8xf32> to vector<1x8xf32>
    %c0_15 = arith.constant 0 : index
    %c0_16 = arith.constant 0 : index
    %20 = vector.load %arg7[%c0_15, %c0_16] : memref<1x1xf32, #tpu.memory_space<vmem>>, vector<1x1xf32>
    %21 = vector.broadcast %20 : vector<1x1xf32> to vector<1x8xf32>
    %22 = arith.addf %19, %21 : vector<1x8xf32>
    %c0_17 = arith.constant 0 : index
    %c0_18 = arith.constant 0 : index
    %23 = vector.load %arg8[%c0_17, %c0_18] : memref<1x8xf32, #tpu.memory_space<vmem>>, vector<1x8xf32>
    tpu.vector_store %arg8[%c0_17, %c0_18], %22 {strides = array<i32>} : memref<1x8xf32, #tpu.memory_space<vmem>>, vector<1x8xf32>,
    return
  }
  func.func @transform_0(%arg0: i32) -> (i32, i32) {
    %c0_i32 = arith.constant 0 : i32
    %c0_i32_0 = arith.constant 0 : i32
    return %c0_i32, %arg0 : i32, i32
  }
  func.func @transform_1(%arg0: i32) -> (i32, i32) {
    %c0_i32 = arith.constant 0 : i32
    %c0_i32_0 = arith.constant 0 : i32
    %c0_i32_1 = arith.constant 0 : i32
    return %c0_i32, %c0_i32_0 : i32, i32
  }
  func.func @transform_2(%arg0: i32) -> (i32, i32) {
    %c0_i32 = arith.constant 0 : i32
    %c0_i32_0 = arith.constant 0 : i32
    %c0_i32_1 = arith.constant 0 : i32
    return %c0_i32, %c0_i32_0 : i32, i32
  }
  func.func @transform_3(%arg0: i32) -> (i32, i32) {
    %c0_i32 = arith.constant 0 : i32
    %c0_i32_0 = arith.constant 0 : i32
    %c0_i32_1 = arith.constant 0 : i32
    return %c0_i32, %c0_i32_0 : i32, i32
  }
  func.func @transform_4(%arg0: i32) -> (i32, i32) {
    %c0_i32 = arith.constant 0 : i32
    %c0_i32_0 = arith.constant 0 : i32
    %c0_i32_1 = arith.constant 0 : i32
    return %c0_i32, %c0_i32_0 : i32, i32
  }
  func.func @transform_5(%arg0: i32) -> (i32, i32) {
    %c0_i32 = arith.constant 0 : i32
    %c0_i32_0 = arith.constant 0 : i32
    %c0_i32_1 = arith.constant 0 : i32
    return %c0_i32, %c0_i32_0 : i32, i32
  }
  func.func @transform_6(%arg0: i32) -> (i32, i32) {
    %c0_i32 = arith.constant 0 : i32
    %c0_i32_0 = arith.constant 0 : i32
    %c0_i32_1 = arith.constant 0 : i32
    return %c0_i32, %c0_i32_0 : i32, i32
  }
  func.func @transform_7(%arg0: i32) -> (i32, i32) {
    %c0_i32 = arith.constant 0 : i32
    %c0_i32_0 = arith.constant 0 : i32
    return %c0_i32, %arg0 : i32, i32
  }
}

</mosaic_0001>

<bundles_post_ra>
// kernel: tpu_custom_call.1
= control target key start
LH: loop header
LB: loop body
LE: loop exit
PB: predicated region body
PF: predicated region fallthrough
CT: control target
= control target key end

     0   :  { %s573_s0 = inlined_call_operand.vmem [shape: f32[8,8], index: 0, kind: input, shape index: {}]   ;;  %s574_s1 = inlined_call_operand.vmem [shape: f32[32,8], index: 1, kind: input, shape index: {}]   ;;  %s575_s2 = inlined_call_operand.vmem [shape: f32[32,1], index: 2, kind: input, shape index: {}]   ;;  %s576_s3 = inlined_call_operand.vmem [shape: f32[32,32], index: 3, kind: input, shape index: {}]   ;;  %s577_s4 = inlined_call_operand.vmem [shape: f32[32,1], index: 4, kind: input, shape index: {}]   ;;  %s578_s5 = inlined_call_operand.vmem [shape: f32[32,1], index: 5, kind: input, shape index: {}]   ;;  %s579_s6 = inlined_call_operand.<no memory space> [shape: f32[1,1], index: 6, kind: input, shape index: {}]   ;;  %s580_s7 = inlined_call_operand.hbm [shape: f32[1,8], index: 7, kind: output, shape index: {}]  }
   0x1   :  { %v12_v0 = vstv %s579_s6 }
   0x2   :  { %13 = vst [vmem:[#allocation2] sm:$0x1] %v12_v0 }
   0x3   :  { %v29_v1 = vld [vmem:[%s573_s0] sm:$0xff]  ;;  %vm58_vm0 = vcmask 64512   ;;  %v31_v3 = vld [vmem:[%s574_s1 + $0x8] sm:$0xff]  ;;  %v32_v4 = vld [vmem:[%s574_s1 + $0x10] sm:$0xff]  ;;  %v441_v6 = vmov 0  }
   0x4   :  { %v30_v2 = vld [vmem:[%s574_s1] sm:$0xff]  ;;  %379 = vmatprep.subr.mxu0 %v29_v1  ;;  %415 = vset.pattern.permute.xlu0 %v441_v6  ;;  %v36_v7 = vld [vmem:[%s575_s2 + $0x10] sm:$0xff]  ;;  %v33_v8 = vld [vmem:[%s574_s1 + $0x18] sm:$0xff] }
   0x5   :  { %381 = vmatprep.mubr.msk.f32.mxu0 %vm58_vm0, %v30_v2  ;;  %v34_v5 = vld [vmem:[%s575_s2] sm:$0xff]  ;;  %380 = vmatpush3.msra.mxu0 %v29_v1  ;;  %v35_v9 = vld [vmem:[%s575_s2 + $0x8] sm:$0xff]  ;;  %v37_v10 = vld [vmem:[%s575_s2 + $0x18] sm:$0xff] }
   0x6   :  { %382 = vmatmul.mubr.msk.f32.vlgmr.msra.gmra.mrb[0].mxu0 %vm58_vm0, %v31_v3  ;;  %40 = vperm.xlu0 %415, %v34_v5  }
   0x7   :  { %384 = vmatprep.mubr.msk.f32.mxu0 %vm58_vm0, %v32_v4  ;;  %416 = vset.pattern.permute.xlu1 %v441_v6 }
   0x8   :  { %50 = vperm.xlu1 %416, %v36_v7  }
   0x9   :  { %14 = vsyncpa [#allocation4], 0  ;;  %v164_v11 = vld [vmem:[%s577_s4] sm:$0xff]  ;;  %v165_v12 = vld [vmem:[%s577_s4 + $0x8] sm:$0xff]  ;;  %vm188_vm1 = vcmask 261120   ;;  %vm342_vm2 = vcmask 57344  }
   0xa   :  { %385 = vmatmul.mubr.msk.f32.gmra.mrb[2].mxu0 %vm58_vm0, %v33_v8  ;;  %45 = vperm.xlu0 %415, %v35_v9   ;;  %v166_v13 = vld [vmem:[%s577_s4 + $0x10] sm:$0xff]  ;;  %v167_v14 = vld [vmem:[%s577_s4 + $0x18] sm:$0xff]  ;;  %v290_v15 = vld [vmem:[%s578_s5] sm:$0xff]  ;;  %v337_v8 = vlaneseq }
   0xb   :  { %v291_v16 = vld [vmem:[%s578_s5 + $0x8] sm:$0xff]  ;;  %v292_v17 = vld [vmem:[%s578_s5 + $0x10] sm:$0xff]  ;;  %v293_v18 = vld [vmem:[%s578_s5 + $0x18] sm:$0xff] }
   0xc   :  { %55 = vperm.xlu1 %416, %v37_v10   ;;  %v331_v19 = vld [vmem:[#allocation2] sm:$0x1]  ;;  %v162_v21 = vld [vmem:[%s576_s3 + $0x10] sm:$0xff]  ;;  %v161_v40 = vld [vmem:[%s576_s3 + $0x8] sm:$0xff] }
   0xd   :  { %v160_v20 = vld [vmem:[%s576_s3] sm:$0xff]  ;;  %398 = vmatprep.mubr.msk.f32.mxu1 %vm188_vm1, %v162_v21  ;;  %v163_v41 = vld [vmem:[%s576_s3 + $0x18] sm:$0xff]  ;;  %s442_s3 = smov [#allocation3]  }
   0xe   :  { %170 = vperm.xlu0 %415, %v164_v11   ;;  %395 = vmatprep.mubr.msk.f32.mxu0 %vm188_vm1, %v160_v20  ;;  %v338_v11 = vshrl.u32 %v337_v8, 7  ;;  %s350_s14 = sshll.u32 %s442_s3, 4  ;;  %s351_s14 = int_to_ptr.vmem [resolvable:$true] %s350_s14 }
   0xf   :  { %s417_s15 = scalar_lea.vmem %s351_s14, 16  ;;  %s421_s16 = scalar_lea.vmem %s351_s14, 32 }
  0x10   :  { %175 = vperm.xlu1 %416, %v165_v12   ;;  %p418_p0 = scmp.ne.s32.totalorder %s351_s14, %s417_s15  ;;  %p422_p1 = scmp.lt.s32.totalorder %s351_s14, %s351_s14 }
  0x11   :  { %p423_p2 = scmp.lt.s32.totalorder %s421_s16, %s417_s15 }
  0x12   :  { %180 = vperm.xlu0 %415, %v166_v13  }
  0x13   :  { %p424_p3 = por %p423_p2, %p422_p1 }
  0x14   :  { %185 = vperm.xlu1 %416, %v167_v14   ;;  %v339_v14 = vsub.s32 0, %v338_v11 }
  0x15   :  { %p425_p4 = pnand %p424_p3, %p418_p0 }
  0x16   :  { %296 = vperm.xlu0 %415, %v290_v15  }
  0x18   :  { %301 = vperm.xlu1 %416, %v291_v16  }
  0x1a   :  { %306 = vperm.xlu0 %415, %v292_v17  }
  0x1c   :  { %311 = vperm.xlu1 %416, %v293_v18  }
  0x1e   :  { %334 = vperm.xlu0 %415, %v331_v19  }
  0x85   :  { %v41_v22 = vpop.permute.xlu0 %40 }
  0x87   :  { %v51_v23 = vpop.permute.xlu1 %50 }
  0x89   :  { %v46_v24 = vpop.permute.xlu0 %45 }
  0x8b   :  { %v56_v30 = vpop.permute.xlu1 %55 }
  0x8d   :  { %v171_v42 = vpop.permute.xlu0 %170 }
  0x8f   :  { %v176_v43 = vpop.permute.xlu1 %175 }
  0x91   :  { %v181_v44 = vpop.permute.xlu0 %180 }
  0x93   :  { %v186_v45 = vpop.permute.xlu1 %185 }
  0x95   :  { %v297_v46 = vpop.permute.xlu0 %296 }
  0x97   :  { %v302_v47 = vpop.permute.xlu1 %301 }
  0x99   :  { %v307_v60 = vpop.permute.xlu0 %306 }
  0x9b   :  { %v312_v0 = vpop.permute.xlu1 %311 }
  0x9d   :  { %v335_v16 = vpop.permute.xlu0 %334 }
  0x9e   :  { %v340_v18 = vrot.slane %v335_v16, %v339_v14 }
  0xd9   :  { %v383_v25 = vpop.f32.mrb[0].mxu0 }
  0xda   :  { %v143_v26 = vadd.f32 %v383_v25, %v46_v24  ;;  %v137_v27 = vpop.f32.mrb[1].mxu0 }
  0xdb   :  { %v138_v28 = vadd.f32 %v137_v27, %v41_v22 }
  0xdc   :  { %v157_v29 = vmax.f32 %v143_v26, 0.0 }
  0xdd   :  { %v156_v31 = vmax.f32 %v138_v28, 0.0  ;;  %v386_v32 = vpop.f32.mrb[2].mxu0 }
  0xde   :  { %v153_v33 = vadd.f32 %v386_v32, %v56_v30  ;;  %v147_v34 = vpop.f32.mrb[3].mxu0 }
  0xdf   :  { %v401_v35 = vpack.c.bf16 %v157_v29, %v156_v31  ;;  %v148_v36 = vadd.f32 %v147_v34, %v51_v23 }
  0xe0   :  { %v159_v37 = vmax.f32 %v153_v33, 0.0 }
  0xe1   :  { %v158_v38 = vmax.f32 %v148_v36, 0.0  ;;  %402 = vmatprep.subr.bf16.mxu0 %v401_v35  ;;  %409 = vmatprep.subr.bf16.mxu1 %v401_v35 }
  0xe2   :  { %404 = vmatpush3.bf16.msra.mxu0 %v401_v35  ;;  %411 = vmatpush3.bf16.msra.mxu1 %v401_v35 }
  0xe3   :  { %v405_v39 = vpack.c.bf16 %v159_v37, %v158_v38 }
  0xe5   :  { %406 = vmatprep.subr.bf16.mxu0 %v405_v39  ;;  %410 = vmatprep.subr.bf16.mxu1 %v405_v39 }
  0xe6   :  { %408 = vmatpush3.bf16.msra.mxu0 %v405_v39  ;;  %412 = vmatpush3.bf16.msra.mxu1 %v405_v39 }
  0xe9   :  { %396 = vmatmul.mubr.msk.f32.vlgmr.msra.gmra.mrb[4].mxu0 %vm188_vm1, %v161_v40  ;;  %399 = vmatmul.mubr.msk.f32.vlgmr.msra.gmra.mrb[0].mxu1 %vm188_vm1, %v163_v41 }
 0x1bc   :  { %v397_v48 = vpop.f32.mrb[4].mxu0  ;;  %v400_v49 = vpop.f32.mrb[0].mxu1 }
 0x1bd   :  { %v273_v50 = vadd.f32 %v397_v48, %v176_v43  ;;  %v283_v51 = vadd.f32 %v400_v49, %v186_v45  ;;  %v267_v52 = vpop.f32.mrb[5].mxu0  ;;  %v277_v53 = vpop.f32.mrb[1].mxu1 }
 0x1be   :  { %v268_v54 = vadd.f32 %v267_v52, %v171_v42  ;;  %v278_v55 = vadd.f32 %v277_v53, %v181_v44 }
 0x1bf   :  { %v287_v56 = vmax.f32 %v273_v50, 0.0  ;;  %v289_v57 = vmax.f32 %v283_v51, 0.0 }
 0x1c0   :  { %v286_v58 = vmax.f32 %v268_v54, 0.0  ;;  %v288_v59 = vmax.f32 %v278_v55, 0.0 }
 0x1c1   :  { %v315_v61 = vmul.f32 %v302_v47, %v287_v56  ;;  %v317_v2 = vmul.f32 %v312_v0, %v289_v57 }
 0x1c2   :  { %v314_v62 = vmul.f32 %v297_v46, %v286_v58  ;;  %v316_v63 = vmul.f32 %v307_v60, %v288_v59 }
 0x1c3   :  { %v319_v1 = vsel %vm58_vm0, %v315_v61, 0.0  ;;  %v323_v7 = vsel %vm58_vm0, %v317_v2, 0.0 }
 0x1c4   :  { %v318_v3 = vsel %vm58_vm0, %v314_v62, 0.0  ;;  %v321_v5 = vsel %vm58_vm0, %v316_v63, 0.0 }
 0x1c5   :  { %v320_v4 = vadd.f32 %v319_v1, %v318_v3 }
 0x1c7   :  { %v322_v6 = vadd.f32 %v321_v5, %v320_v4 }
 0x1c9   :  { %v324_v9 = vadd.f32 %v323_v7, %v322_v6 }
 0x1cb   :  { %v325_v10 = vrot.slane %v324_v9, 4 }
 0x1cd   :  { %v326_v12 = vadd.f32 %v325_v10, %v324_v9 }
 0x1cf   :  { %v327_v13 = vrot.slane %v326_v12, 2 }
 0x1d1   :  { %v328_v15 = vadd.f32 %v327_v13, %v326_v12 }
 0x1d3   :  { %v329_v17 = vrot.slane %v328_v15, 1 }
 0x1d5   :  { %v330_v19 = vadd.f32 %v329_v17, %v328_v15 }
 0x1d7   :  { %v341_v20 = vadd.f32 %v340_v18, %v330_v19 }
 0x1d9   :  { %343 = vst.msk [vmem:[#allocation3] sm:$0x1] %vm342_vm2, %v341_v20 }
 0x1da   :  { %428 = shalt.err (!%p425_p4)
}
 0x1db   :  { %s429_s19 = scalar_lea.hbm %s580_s7, 16 }
 0x1dc   :  { %p430_p5 = scmp.ne.s32.totalorder %s580_s7, %s429_s19  ;;  %p433_p6 = scmp.lt.u32.totalorder %s429_s19, %s580_s7 }
 0x1de   :  { %p435_p7 = pnand %p433_p6, %p430_p5 }
 0x1e0   :  { %438 = shalt.err (!%p435_p7)
}
 0x1e1   :  { %353 = dma.vmem_to_hbm [thread:$0]  %s351_s14, 16, %s580_s7, [#allocation4]  }
 0x1e2   :  { %439 = dma.done.wait [#allocation4], 16  }
 0x1e3   :  { %440 = vsyncadd [#allocation4], 4294967280 }
 0x1e4   :  { %357 = vsyncpa [#allocation4], 1 }

</bundles_post_ra>
